<compile_context>
chip_gen: v7x
topology: tpu7x:2x2x1
jax: 0.10.0
libtpu: 0.0.40
codegen_flags: <defaults>
</compile_context>

<pallas_src>
import math
import functools

import jax
import jax.numpy as jnp
from jax.experimental import pallas as pl
from jax.experimental.pallas import tpu as pltpu


_DEFAULT_TILE_P = 2048                      # chunk size when the map is too big to keep resident
_SINGLE_CHUNK_VMEM_BUDGET = 24 * 1024 * 1024   # resident-src path budget (v7x-safe)
_IOTA_SCRATCH_BUDGET = 4 * 1024 * 1024         # max size of the hoisted iota scratch


def _round_up(x, m):
    return ((x + m - 1) // m) * m


def _flosp_kernel(idx_ref, src_ref, out_ref, *scratch,
                  tile_p, tile_n, multi_chunk, compute_dtype, precision):
    # idx_ref: (1, TN)  int32  flattened image index per voxel (-1 = out of FOV / pad)
    # src_ref: (C, TP)  compute_dtype, current P-chunk of the feature map (natural layout)
    # out_ref: (C, TN)  f32    gathered features for this voxel tile (lane-dense)
    # scratch: optionally a (TP, TN) int32 VMEM iota (hoisted, filled once per voxel tile)
    k = pl.program_id(1)

    if scratch:
        (iota_ref,) = scratch

        @pl.when(k == 0)
        def _fill_iota():
            iota_ref[...] = jax.lax.broadcasted_iota(jnp.int32, (tile_p, tile_n), 0)

        iota = iota_ref[...]
    else:
        iota = jax.lax.broadcasted_iota(jnp.int32, (tile_p, tile_n), 0)

    # One-hot selection restricted to this chunk: indices outside
    # [k*TP, (k+1)*TP) (including the -1 sentinel and padded voxels) never
    # match the local iota, so they contribute exactly zero.
    local_idx = idx_ref[...] - k * tile_p                       # (1, TN) int32
    onehot = (iota == local_idx).astype(compute_dtype)          # (TP, TN)

    update = jnp.dot(src_ref[...], onehot,
                     preferred_element_type=jnp.float32,
                     precision=precision)                       # (C, TN) f32

    if multi_chunk:
        @pl.when(k == 0)
        def _init():
            out_ref[...] = jnp.zeros_like(out_ref)

        out_ref[...] += update
    else:
        out_ref[...] = update


def flosp_forward(x2d, projected_pix, fov_mask, *, scene_size, dataset,
                  project_scale, tile_n=512, tile_p=None,
                  compute_dtype=jnp.bfloat16):
    """Pallas implementation of FLoSP.forward.

    x2d:           (C, H, W) float feature map
    projected_pix: (N, 2) int pixel coords (x, y) per voxel
    fov_mask:      (N,)  bool
    compute_dtype: MXU operand dtype.  jnp.bfloat16 (default) is fastest and
                   only rounds the gathered features; jnp.float32 reproduces
                   the reference gather exactly (Precision.HIGHEST).
    """
    c, h, w = x2d.shape
    p = h * w
    n = projected_pix.shape[0]
    itemsize = jnp.dtype(compute_dtype).itemsize

    # Flattened gather index per voxel; -1 marks out-of-FOV (never matches any
    # in-chunk iota value, so those voxels come out exactly zero -- same as the
    # reference's "append a zero column and gather index h*w" trick).
    pix_x = projected_pix[:, 0].astype(jnp.int32)
    pix_y = projected_pix[:, 1].astype(jnp.int32)
    flat_idx = jnp.where(fov_mask, pix_y * w + pix_x, -1).astype(jnp.int32)

    # ---------------- tiling ----------------
    n_pad128 = _round_up(max(n, 1), 128)
    p_pad128 = _round_up(p, 128)

    tile_n = _round_up(min(tile_n, n_pad128), 128)
    # v7x has 2 TensorCores per chip; the "parallel" grid axis is what shards
    # across them, so keep >= 2 voxel tiles whenever possible.
    if n_pad128 >= 256 and n_pad128 // tile_n < 2:
        tile_n = _round_up((n_pad128 + 1) // 2, 128)

    if tile_p is None:
        # Single-chunk (src resident, no accumulation) when the double-buffered
        # src plus the (TP, TN) one-hot / iota intermediates fit a v7x-safe
        # budget; otherwise stream fixed-size chunks.
        single_cost = p_pad128 * (2 * c * itemsize + tile_n * (itemsize + 4))
        if single_cost <= _SINGLE_CHUNK_VMEM_BUDGET:
            tile_p = p_pad128
        else:
            tile_p = min(_DEFAULT_TILE_P, p_pad128)
    else:
        tile_p = min(_round_up(tile_p, 128), p_pad128)

    n_pad = _round_up(n, tile_n)
    p_pad = _round_up(p, tile_p)
    n_tiles = n_pad // tile_n
    p_tiles = p_pad // tile_p
    multi_chunk = p_tiles > 1
    use_iota_scratch = multi_chunk and (tile_p * tile_n * 4 <= _IOTA_SCRATCH_BUDGET)

    # ---------------- operands (no transposes) ----------------
    idx = jnp.full((1, n_pad), -1, dtype=jnp.int32).at[0, :n].set(flat_idx)

    src = x2d.reshape(c, p).astype(compute_dtype)               # natural (C, P) layout
    if p_pad != p:
        src = jnp.pad(src, ((0, 0), (0, p_pad - p)))

    precision = (jax.lax.Precision.HIGHEST
                 if jnp.dtype(compute_dtype) == jnp.dtype(jnp.float32) else None)

    kernel = functools.partial(
        _flosp_kernel, tile_p=tile_p, tile_n=tile_n, multi_chunk=multi_chunk,
        compute_dtype=compute_dtype, precision=precision)

    scratch_shapes = ([pltpu.VMEM((tile_p, tile_n), jnp.int32)]
                      if use_iota_scratch else [])

    src_bytes = p_pad * c * itemsize * (1 if p_tiles == 1 else n_tiles)
    cost = pl.CostEstimate(
        flops=2 * n_pad * p_pad * c,
        transcendentals=0,
        bytes_accessed=int(src_bytes + n_pad * 4 + n_pad * c * 4),
    )

    out = pl.pallas_call(
        kernel,
        out_shape=jax.ShapeDtypeStruct((c, n_pad), jnp.float32),
        grid_spec=pltpu.PrefetchScalarGridSpec(
            num_scalar_prefetch=0,
            grid=(n_tiles, p_tiles),                           # reduction (P-chunk) axis last
            in_specs=[
                pl.BlockSpec((1, tile_n), lambda i, k: (0, i)),   # voxel indices (lane-dense)
                pl.BlockSpec((c, tile_p), lambda i, k: (0, k)),   # src chunk (resident if p_tiles==1)
            ],
            out_specs=pl.BlockSpec((c, tile_n), lambda i, k: (0, i)),
            scratch_shapes=scratch_shapes,
        ),
        compiler_params=pltpu.CompilerParams(
            dimension_semantics=("parallel", "arbitrary"),
            vmem_limit_bytes=32 * 1024 * 1024,
        ),
        cost_estimate=cost,
    )(idx, src)

    src_feature = out[:, :n].astype(x2d.dtype)                  # (C, N) -- no transpose needed

    # Final reshape/permute to the 3D volume is layout glue; stays in JAX.
    if dataset == "NYU":
        dx = math.ceil(scene_size[0] / project_scale)
        dz = math.ceil(scene_size[2] / project_scale)
        dy = math.ceil(scene_size[1] / project_scale)
        x3d = src_feature.reshape(c, dx, dz, dy)
        x3d = jnp.transpose(x3d, (0, 1, 3, 2))                  # (C, X, Y, Z)
    elif dataset == "kitti":
        dx = scene_size[0] // project_scale
        dy = scene_size[1] // project_scale
        dz = scene_size[2] // project_scale
        x3d = src_feature.reshape(c, dx, dy, dz)
    else:
        raise ValueError(f"unknown dataset {dataset}")
    return x3d


def flosp_reference(x2d, projected_pix, fov_mask, *, scene_size, dataset,
                    project_scale):
    """Pure-JAX reference matching the PyTorch module exactly."""
    c, h, w = x2d.shape
    src = x2d.reshape(c, -1)
    src = jnp.concatenate([src, jnp.zeros((c, 1), src.dtype)], axis=1)
    pix_x, pix_y = projected_pix[:, 0], projected_pix[:, 1]
    img_indices = pix_y * w + pix_x
    img_indices = jnp.where(fov_mask, img_indices, h * w)
    src_feature = src[:, img_indices]                           # (C, N)
    if dataset == "NYU":
        dx = math.ceil(scene_size[0] / project_scale)
        dz = math.ceil(scene_size[2] / project_scale)
        dy = math.ceil(scene_size[1] / project_scale)
        x3d = src_feature.reshape(c, dx, dz, dy)
        x3d = jnp.transpose(x3d, (0, 1, 3, 2))
    else:
        dx = scene_size[0] // project_scale
        dy = scene_size[1] // project_scale
        dz = scene_size[2] // project_scale
        x3d = src_feature.reshape(c, dx, dy, dz)
    return x3d


if __name__ == "__main__":
    key = jax.random.PRNGKey(0)
    k1, k2, k3, k4 = jax.random.split(key, 4)

    # Small synthetic configuration.
    C, H, W = 8, 16, 16
    scene_size = (16, 8, 16)      # NYU convention: (X, Y, Z)
    project_scale = 2
    DX = math.ceil(scene_size[0] / project_scale)   # 8
    DZ = math.ceil(scene_size[2] / project_scale)   # 8
    DY = math.ceil(scene_size[1] / project_scale)   # 4
    N = DX * DZ * DY                                # 256 voxels

    x2d = jax.random.normal(k1, (C, H, W), dtype=jnp.float32)
    pix_x = jax.random.randint(k2, (N,), 0, W, dtype=jnp.int32)
    pix_y = jax.random.randint(k3, (N,), 0, H, dtype=jnp.int32)
    projected_pix = jnp.stack([pix_x, pix_y], axis=1)           # (N, 2)
    fov_mask = jax.random.uniform(k4, (N,)) > 0.3               # (N,) bool

    ref = flosp_reference(x2d, projected_pix, fov_mask,
                          scene_size=scene_size, dataset="NYU",
                          project_scale=project_scale)

    # 1) Default path: bf16 compute, resident src, 2 voxel tiles (parallel axis).
    out_bf16 = flosp_forward(x2d, projected_pix, fov_mask,
                             scene_size=scene_size, dataset="NYU",
                             project_scale=project_scale)
    out_bf16 = jax.block_until_ready(out_bf16)
    assert out_bf16.shape == (C, DX, DY, DZ), out_bf16.shape
    assert jnp.allclose(out_bf16, ref, atol=3e-2, rtol=1e-2), \
        "bf16 mismatch vs reference beyond bf16 tolerance"

    # 2) f32 compute (Precision.HIGHEST): exact vs reference.
    out_f32 = flosp_forward(x2d, projected_pix, fov_mask,
                            scene_size=scene_size, dataset="NYU",
                            project_scale=project_scale,
                            compute_dtype=jnp.float32)
    out_f32 = jax.block_until_ready(out_f32)
    assert jnp.allclose(out_f32, ref, atol=1e-5, rtol=1e-5), "f32 mismatch vs reference"

    # 3) Small tiles: exercises the multi-chunk accumulate-into-out_ref path
    #    with the hoisted iota scratch (grid 2x2).
    out_small = flosp_forward(x2d, projected_pix, fov_mask,
                              scene_size=scene_size, dataset="NYU",
                              project_scale=project_scale,
                              tile_n=128, tile_p=128,
                              compute_dtype=jnp.float32)
    out_small = jax.block_until_ready(out_small)
    assert jnp.allclose(out_small, ref, atol=1e-5, rtol=1e-5), \
        "chunked f32 mismatch vs reference"

    # 4) kitti reshape branch.
    ref_kitti = flosp_reference(x2d, projected_pix, fov_mask,
                                scene_size=scene_size, dataset="kitti",
                                project_scale=project_scale)
    out_kitti = flosp_forward(x2d, projected_pix, fov_mask,
                              scene_size=scene_size, dataset="kitti",
                              project_scale=project_scale,
                              compute_dtype=jnp.float32)
    out_kitti = jax.block_until_ready(out_kitti)
    assert jnp.allclose(out_kitti, ref_kitti, atol=1e-5, rtol=1e-5), \
        "kitti f32 mismatch vs reference"

    print("KERNEL_OK")
</pallas_src>

<mosaic_0001>
module attributes {stable_mosaic.version = 11 : i64} {
  func.func @_flosp_kernel(%arg0: i32, %arg1: i32, %arg2: memref<1x128xi32, #tpu.memory_space<vmem>>, %arg3: memref<8x256xbf16, #tpu.memory_space<vmem>>, %arg4: memref<8x128xf32, #tpu.memory_space<vmem>>) attributes {dimension_semantics = [#tpu.dimension_semantics<parallel>, #tpu.dimension_semantics<arbitrary>], iteration_bounds = array<i64: 2, 1>, scalar_prefetch = 0 : i64, scratch_operands = 0 : i64, tpu.core_type = #tpu.core_type<tc>, window_params = [{transform_indices = @transform_0, window_bounds = array<i64: 1, 128>}, {transform_indices = @transform_1, window_bounds = array<i64: 8, 256>}, {transform_indices = @transform_2, window_bounds = array<i64: 8, 128>}]} {
    %0 = tpu.iota {dimensions = array<i32: 0>} : vector<256x128xi32>
    %c0 = arith.constant 0 : index
    %c0_0 = arith.constant 0 : index
    %1 = vector.load %arg2[%c0, %c0_0] : memref<1x128xi32, #tpu.memory_space<vmem>>, vector<1x128xi32>
    %c256_i32 = arith.constant 256 : i32
    %2 = arith.muli %arg1, %c256_i32 : i32
    %3 = vector.broadcast %2 : i32 to vector<1x128xi32>
    %4 = arith.subi %1, %3 : vector<1x128xi32>
    %5 = vector.broadcast %4 : vector<1x128xi32> to vector<256x128xi32>
    %6 = arith.cmpi eq, %0, %5 : vector<256x128xi32>
    %7 = arith.extui %6 : vector<256x128xi1> to vector<256x128xi32>
    %8 = arith.sitofp %7 : vector<256x128xi32> to vector<256x128xf32>
    %9 = arith.truncf %8 : vector<256x128xf32> to vector<256x128xbf16>
    %c0_1 = arith.constant 0 : index
    %c0_2 = arith.constant 0 : index
    %10 = vector.load %arg3[%c0_1, %c0_2] : memref<8x256xbf16, #tpu.memory_space<vmem>>, vector<8x256xbf16>
    %cst = arith.constant dense<0.000000e+00> : vector<8x128xf32>
    %11 = tpu.matmul %10, %9, %cst {dimension_numbers = #tpu.dot_dimension_numbers<[1], [0], [0], [1], [0, 0, 1, 1], [], []>} : vector<8x256xbf16>, vector<256x128xbf16>, vector<8x128xf32> -> vector<8x128xf32>
    %c0_3 = arith.constant 0 : index
    %c0_4 = arith.constant 0 : index
    %12 = vector.load %arg4[%c0_3, %c0_4] : memref<8x128xf32, #tpu.memory_space<vmem>>, vector<8x128xf32>
    tpu.vector_store %arg4[%c0_3, %c0_4], %11 {strides = array<i32>} : memref<8x128xf32, #tpu.memory_space<vmem>>, vector<8x128xf32>,
    return
  }
  func.func @transform_0(%arg0: i32, %arg1: i32) -> (i32, i32) {
    %c0_i32 = arith.constant 0 : i32
    %c0_i32_0 = arith.constant 0 : i32
    return %c0_i32, %arg0 : i32, i32
  }
  func.func @transform_1(%arg0: i32, %arg1: i32) -> (i32, i32) {
    %c0_i32 = arith.constant 0 : i32
    %c0_i32_0 = arith.constant 0 : i32
    return %c0_i32, %arg1 : i32, i32
  }
  func.func @transform_2(%arg0: i32, %arg1: i32) -> (i32, i32) {
    %c0_i32 = arith.constant 0 : i32
    %c0_i32_0 = arith.constant 0 : i32
    return %c0_i32, %arg0 : i32, i32
  }
}

</mosaic_0001>

<bundles_post_ra>
// kernel: tpu_custom_call.1
= control target key start
LH: loop header
LB: loop body
LE: loop exit
PB: predicated region body
PF: predicated region fallthrough
CT: control target
= control target key end

     0   :  { %7 = vsyncpa [#allocation3], 0  ;;  %s1138_s0 = inlined_call_operand.hbm [shape: s32[1,256], index: 0, kind: input, shape index: {}]   ;;  %s1139_s1 = inlined_call_operand.hbm [shape: bf16[8,256], index: 1, kind: input, shape index: {}]   ;;  %s1140_s2 = inlined_call_operand.hbm [shape: f32[8,256], index: 2, kind: output, shape index: {}]  }
   0x1   :  { %9 = vsyncpa [#allocation3 + $0x1], 0 }
   0x2   :  { %10 = vsyncpa [#allocation6], 0 }
   0x3   :  { %11 = vsyncpa [#allocation4], 0 }
   0x4   :  { %13 = vsyncpa [#allocation4 + $0x1], 0  ;;  %s837_s9 = smov 0   ;;  %s839_s10 = smov 0  }
   0x5   :  { %s841_s11 = smov 0   ;;  %s843_s12 = smov 0  }
   0x6   :  { %s845_s13 = smov 0   ;;  %s847_s14 = smov 0  }
   0x7 LB: > { %s494_s15 = sadd.s32 4294967295, %s816_s14   ;;  %s495_s16 = sadd.s32 4294967294, %s816_s14   ;;  %s816_s14 = sphi %s847_s14, %s19_s14   ;;  %s812_s13 = sphi %s845_s13, %s1165_s13   ;;  %s808_s12 = sphi %s843_s12, %s1164_s12   ;;  %s804_s11 = sphi %s841_s11, %s1163_s11   ;;  %s800_s10 = sphi %s839_s10, %s1162_s10   ;;  %s796_s9 = sphi %s837_s9, %s1161_s9  }
   0x8   : > { %p51_p0 = scmp.ne.s32.totalorder %s800_s10, %s796_s9  ;;  %p871_p1 = scmp.eq.s32.totalorder %s494_s15, 0 }
   0x9   : > { %p875_p2 = scmp.eq.s32.totalorder %s494_s15, 1  ;;  %p107_p3 = scmp.eq.s32.totalorder %s495_s16, 1 }
   0xa   : > { %s1145_s17 = scalar_select %p871_p1, 1, 0 }
   0xb   : > { %s1146_s18 = scalar_select %p875_p2, 1, 0 }
   0xc   : > { %p881_p4 = por %p871_p1, %p51_p0  ;;  %p496_p5 = scmp.ge.s32.totalorder %s816_s14, 1 }
   0xd   : > { %p886_p6 = por %p107_p3, %p51_p0  ;;  %p114_p7 = scmp.lt.s32.totalorder %s816_s14, 3 }
   0xe   : > { %s1147_s19 = scalar_select %p881_p4, 1, 0 }
   0xf   : > { %s1148_s20 = scalar_select %p886_p6, 1, 0 }
  0x10   : > { %p891_p8 = pnand %p496_p5, %p114_p7  ;;  %s818_s22 = smov [#allocation5]  }
  0x11   : > { %s130_s23 = sshll.u32 %s818_s22, 4  ;;  %s31_s25 = sadd.s32 1, %s812_s13  ;;  %s131_s23 = int_to_ptr.vmem [resolvable:$true] %s130_s23 }
  0x12   : > { %s1149_s21 = scalar_select %p891_p8, 1, 0 }
  0x13   : > { %p604_p10 = pneg %p891_p8  ;;  %s38_s26 = sadd.s32 1, %s804_s11 }
  0x14   : > { %p906_p12 = scmp.ge.s32.totalorder %s31_s25, 2  ;;  %s672_s30 = scalar_lea.hbm %s1139_s1, 128 }
  0x15   : > { %p900_p11 = pnand %p604_p10, %p871_p1  ;;  %p673_p13 = scmp.ne.s32.totalorder %s1139_s1, %s672_s30 }
  0x16   : > { %s1151_s27 = scalar_select %p906_p12, 1, 0 }
  0x17   : > { %p674_p0 = pneg %p900_p11  ;;  %p679_p7 = scmp.lt.u32.totalorder %s672_s30, %s1139_s1 }
  0x19   : > { %p675_p3 = pnand %p674_p0, %p673_p13 }
  0x1b   : > { %p676_p5 = pneg %p675_p3 }
  0x1d   : > { %p681_p10 = pnand %p679_p7, %p676_p5 }
  0x1f   : > { %684 = shalt.err (!%p681_p10)
}
  0x20   : > { %s685_s7 = scalar_lea.vmem %s131_s23, 128  ;;  %p693_p4 = scmp.lt.s32.totalorder %s131_s23, %s131_s23 }
  0x21   : > { %p686_p9 = scmp.ne.s32.totalorder %s131_s23, %s685_s7  ;;  %p694_p8 = scmp.lt.s32.totalorder %s685_s7, %s685_s7 }
  0x23   : > { %p688_p6 = pnand %p686_p9, %p674_p0  ;;  %p695_p2 = por %p694_p8, %p693_p4 }
  0x25   : > { %p689_p1 = pneg %p688_p6 }
  0x27   : > { %p696_p12 = pnand %p695_p2, %p689_p1 }
  0x29   : > { %699 = shalt.err (!%p696_p12)
}
  0x2a   : > { %607 = dma.hbm_to_vmem [thread:$0]  (!%p900_p11), %s1139_s1, 128, %s131_s23, [#allocation6]  }
  0x2b   : > { %p1152_p4 = scmp.ne.s32.totalorder %s1151_s27, 0  ;;  %p45_p1 = scmp.ne.s32.totalorder %s804_s11, %s800_s10 }
  0x2c   : > { %p46_p2 = scmp.eq.s32.totalorder %s816_s14, 0  ;;  %p617_p6 = scmp.lt.s32.totalorder %s816_s14, 2 }
  0x2d   : > { %s1167_s25 = smov (%p1152_p4, %s31_s25), 0  ;;  %p1153_p12 = scmp.ne.s32.totalorder %s1146_s18, 0 }
  0x2e   : > { %s35_s16 = ssub.s32 %s812_s13, %s1167_s25  ;;  %p47_p9 = por %p46_p2, %p45_p1 }
  0x2f   : > { %p36_p8 = scmp.eq.s32.totalorder %s35_s16, 0  ;;  %p938_p13 = por %p1153_p12, %p45_p1 }
  0x30   : > { %s141_s24 = sand.u32 1, %s804_s11   ;;  %s499_s23 = sshll.u32 %s812_s13, 4 }
  0x31   : > { %s946_s28 = scalar_select %p36_p8, %s804_s11, %s38_s26  }
  0x32   : > { %s144_s27 = scalar_lea.vmem [#allocation2], %s141_s24  ;;  %s952_s4 = scalar_lea.hbm %s1138_s0, %s499_s23 }
  0x33   : > { %s151_s29 = sshll.u32 %s144_s27, 4  ;;  %p956_p11 = pnand %p617_p6, %p47_p9  ;;  %s954_s29 = int_to_ptr.vmem [resolvable:$true] %s151_s29 }
  0x34   : > { %s142_s26 = scalar_lea.sflag [#allocation3], %s141_s24  ;;  %s700_s5 = scalar_lea.hbm %s952_s4, 16 }
  0x35   : > { %p701_p0 = scmp.ne.s32.totalorder %s952_s4, %s700_s5  ;;  %p702_p3 = pneg %p956_p11 }
  0x36   : > { %s705_s8 = scalar_lea.hbm %s1138_s0, 32  ;;  %p706_p10 = scmp.lt.u32.totalorder %s952_s4, %s1138_s0 }
  0x37   : > { %p703_p5 = pnand %p702_p3, %p701_p0  ;;  %p707_p4 = scmp.lt.u32.totalorder %s705_s8, %s700_s5 }
  0x38   : > { %p709_p2 = scmp.lt.u32.totalorder %s700_s5, %s952_s4 }
  0x39   : > { %p704_p7 = pneg %p703_p5  ;;  %p708_p1 = por %p707_p4, %p706_p10 }
  0x3b   : > { %p710_p6 = por %p709_p2, %p708_p1 }
  0x3d   : > { %p711_p8 = pnand %p710_p6, %p704_p7 }
  0x3f   : > { %714 = shalt.err (!%p711_p8)
}
  0x40   : > { %s715_s24 = scalar_lea.vmem %s954_s29, 16  ;;  %s819_s23 = smov [#allocation2]  }
  0x41   : > { %p716_p9 = scmp.ne.s32.totalorder %s954_s29, %s715_s24  ;;  %s720_s27 = sshll.u32 %s819_s23, 4  ;;  %s721_s27 = int_to_ptr.vmem [resolvable:$false] %s720_s27 }
  0x42   : > { %s722_s30 = scalar_lea.vmem %s721_s27, 32  ;;  %p723_p5 = scmp.lt.s32.totalorder %s954_s29, %s721_s27 }
  0x43   : > { %p718_p12 = pnand %p716_p9, %p702_p3  ;;  %p724_p10 = scmp.lt.s32.totalorder %s722_s30, %s715_s24 }
  0x45   : > { %p719_p0 = pneg %p718_p12  ;;  %p725_p4 = por %p724_p10, %p723_p5 }
  0x47   : > { %p726_p1 = pnand %p725_p4, %p719_p0 }
  0x49   : > { %729 = shalt.err (!%p726_p1)
}
  0x4a   : > { %611 = dma.hbm_to_vmem [thread:$0]  (!%p956_p11), %s952_s4, 16, %s954_s29, %s142_s26  }
  0x4b   : > { %p1156_p7 = scmp.ne.s32.totalorder %s1149_s21, 0 }
  0x4c   : > { %s988_s3 = sand.u32 (!%p1156_p7), 1, %s800_s10   ;;  %p1157_p3 = scmp.ne.s32.totalorder (!%p1156_p7), %s1147_s19, 0 }
  0x4d   : > { %160 = sbr.rel (%p1156_p7) target bundleno = 358 (0x166), region = 28  ;;  %s163_s5 = scalar_lea.sflag (!%p1156_p7), [#allocation3], %s988_s3 }
  0x4e   : > { %s165_s6 = scalar_lea.vmem (!%p1156_p7), [#allocation2], %s988_s3 }
  0x54   : > { %783 = dma.done.wait (%p1157_p3), %s163_s5, 16  }
  0x55   : > { %785 = vsyncadd (%p1157_p3), %s163_s5, 4294967280  ;;  %p1158_p2 = scmp.ne.s32.totalorder %s1145_s17, 0 }
  0x57   : > { %787 = dma.done.wait (%p1158_p2), [#allocation6], 128  }
  0x58   : > { %789 = vsyncadd (%p1158_p2), [#allocation6], 4294967168  ;;  %v191_v0 = vlaneseq  ;;  %v1011_v11 = vld [vmem:[%s165_s6] ss:$0 sm:$0xff]  ;;  %v820_v14 = vmov 1.0|1.0  }
  0x59   : > { %v344_v23 = vld [vmem:[#allocation5] sm:$0xff]  ;;  %s502_s17 = sshll.u32 %s988_s3, 3  ;;  %s571_s19 = sshll.u32 %s808_s12, 7 }
  0x5a   : > { %v1000_v1 = vshrl.u32 %v191_v0, 7  ;;  %v537_v26 = vcombine.high %v344_v23, %v344_v23  ;;  %v536_v37 = vcombine.low %v344_v23, %v344_v23  ;;  %s188_s21 = scalar_lea.vmem [#allocation7], %s502_s17  ;;  %s1089_s26 = scalar_lea.hbm %s1140_s2, %s571_s19 }
  0x5b   : > { %s407_s29 = sshll.u32 %s188_s21, 4  ;;  %s394_s7 = scalar_lea.sflag [#allocation4], %s988_s3  ;;  %s1091_s29 = int_to_ptr.vmem [resolvable:$true] %s407_s29 }
  0x5c   : > { %v208_v2 = vadd.s32 128, %v1000_v1  ;;  %v209_v3 = vadd.s32 136, %v1000_v1  ;;  %v193_v4 = vadd.s32 8, %v1000_v1  ;;  %v210_v5 = vadd.s32 144, %v1000_v1  ;;  %384 = vmatprep.mubr.bf16.mxu0 %v537_v26  ;;  %s730_s12 = scalar_lea.vmem %s1091_s29, 128  ;;  %s821_s8 = smov [#allocation7]  }
  0x5d   : > { %v211_v6 = vadd.s32 152, %v1000_v1  ;;  %v194_v7 = vadd.s32 16, %v1000_v1  ;;  %v195_v8 = vadd.s32 24, %v1000_v1  ;;  %v212_v9 = vadd.s32 160, %v1000_v1  ;;  %p731_p11 = scmp.ne.s32.totalorder %s1091_s29, %s730_s12  ;;  %s734_s15 = sshll.u32 %s821_s8, 4  ;;  %s735_s15 = int_to_ptr.vmem [resolvable:$false] %s734_s15 }
  0x5e   : > { %v213_v10 = vadd.s32 168, %v1000_v1  ;;  %v196_v12 = vadd.s32 32, %v1000_v1  ;;  %v197_v13 = vadd.s32 40, %v1000_v1  ;;  %vm248_vm0 = vcmp.eq.s32.totalorder %v208_v2, %v1011_v11  ;;  %s736_s16 = scalar_lea.vmem %s735_s15, 256  ;;  %p737_p9 = scmp.lt.s32.totalorder %s1091_s29, %s735_s15 }
  0x5f   : > { %vm249_vm1 = vcmp.eq.s32.totalorder %v209_v3, %v1011_v11  ;;  %vm232_vm2 = vcmp.eq.s32.totalorder %v1000_v1, %v1011_v11  ;;  %vm233_vm3 = vcmp.eq.s32.totalorder %v193_v4, %v1011_v11  ;;  %vm250_vm5 = vcmp.eq.s32.totalorder %v210_v5, %v1011_v11  ;;  %p732_p6 = pnand %p731_p11, %p938_p13  ;;  %p738_p12 = scmp.lt.s32.totalorder %s736_s16, %s730_s12 }
  0x60   : > { %vm554_vm4 = vmpackc.low %vm249_vm1, %vm248_vm0  ;;  %vm251_vm6 = vcmp.eq.s32.totalorder %v211_v6, %v1011_v11  ;;  %vm234_vm7 = vcmp.eq.s32.totalorder %v194_v7, %v1011_v11  ;;  %vm235_vm8 = vcmp.eq.s32.totalorder %v195_v8, %v1011_v11  ;;  %vm252_vm10 = vcmp.eq.s32.totalorder %v212_v9, %v1011_v11 }
  0x61   : > { %574 = vmatprep.subr.msk.bf16.mxu0 %vm554_vm4, %v820_v14  ;;  %vm538_vm9 = vmpackc.low %vm233_vm3, %vm232_vm2  ;;  %vm253_vm11 = vcmp.eq.s32.totalorder %v213_v10, %v1011_v11  ;;  %v214_v15 = vadd.s32 176, %v1000_v1  ;;  %v215_v16 = vadd.s32 184, %v1000_v1  ;;  %vm236_vm15 = vcmp.eq.s32.totalorder %v196_v12, %v1011_v11  ;;  %p733_p8 = pneg %p732_p6  ;;  %p739_p0 = por %p738_p12, %p737_p9 }
  0x62   : > { %575 = vmatpush3.bf16.msk.msra.mxu0 %vm538_vm9, %v820_v14  ;;  %vm556_vm12 = vmpackc.low %vm251_vm6, %vm250_vm5  ;;  %vm237_vm0 = vcmp.eq.s32.totalorder %v197_v13, %v1011_v11  ;;  %v198_v17 = vadd.s32 48, %v1000_v1  ;;  %v199_v18 = vadd.s32 56, %v1000_v1  ;;  %v216_v19 = vadd.s32 192, %v1000_v1 }
  0x63   : > { %576 = vmatprep.subr.msk.bf16.mxu0 %vm556_vm12, %v820_v14  ;;  %vm540_vm13 = vmpackc.low %vm235_vm8, %vm234_vm7  ;;  %vm254_vm1 = vcmp.eq.s32.totalorder %v214_v15, %v1011_v11  ;;  %vm255_vm2 = vcmp.eq.s32.totalorder %v215_v16, %v1011_v11  ;;  %v217_v20 = vadd.s32 200, %v1000_v1  ;;  %v200_v21 = vadd.s32 64, %v1000_v1  ;;  %p740_p5 = pnand %p739_p0, %p733_p8 }
  0x64   : > { %vm558_vm14 = vmpackc.low %vm253_vm11, %vm252_vm10  ;;  %vm238_vm5 = vcmp.eq.s32.totalorder %v198_v17, %v1011_v11  ;;  %vm239_vm6 = vcmp.eq.s32.totalorder %v199_v18, %v1011_v11  ;;  %v201_v22 = vadd.s32 72, %v1000_v1  ;;  %vm256_vm7 = vcmp.eq.s32.totalorder %v216_v19, %v1011_v11 }
  0x65   : > { %vm542_vm3 = vmpackc.low %vm237_vm0, %vm236_vm15  ;;  %vm257_vm8 = vcmp.eq.s32.totalorder %v217_v20, %v1011_v11  ;;  %v218_v24 = vadd.s32 208, %v1000_v1  ;;  %v219_v25 = vadd.s32 216, %v1000_v1  ;;  %vm240_vm11 = vcmp.eq.s32.totalorder %v200_v21, %v1011_v11 }
  0x66   : > { %577 = vmatpush3.bf16.msk.msra.mxu0 %vm540_vm13, %v820_v14  ;;  %vm560_vm4 = vmpackc.low %vm255_vm2, %vm254_vm1  ;;  %vm241_vm12 = vcmp.eq.s32.totalorder %v201_v22, %v1011_v11  ;;  %v202_v27 = vadd.s32 80, %v1000_v1  ;;  %v203_v28 = vadd.s32 88, %v1000_v1  ;;  %v220_v29 = vadd.s32 224, %v1000_v1 }
  0x67   : > { %578 = vmatprep.subr.msk.bf16.mxu0 %vm558_vm14, %v820_v14  ;;  %vm544_vm9 = vmpackc.low %vm239_vm6, %vm238_vm5  ;;  %vm258_vm13 = vcmp.eq.s32.totalorder %v218_v24, %v1011_v11  ;;  %vm259_vm14 = vcmp.eq.s32.totalorder %v219_v25, %v1011_v11  ;;  %v221_v30 = vadd.s32 232, %v1000_v1  ;;  %v204_v31 = vadd.s32 96, %v1000_v1 }
  0x68   : > { %vm562_vm10 = vmpackc.low %vm257_vm8, %vm256_vm7  ;;  %vm242_vm1 = vcmp.eq.s32.totalorder %v202_v27, %v1011_v11  ;;  %vm243_vm2 = vcmp.eq.s32.totalorder %v203_v28, %v1011_v11  ;;  %v205_v32 = vadd.s32 104, %v1000_v1  ;;  %v222_v33 = vadd.s32 240, %v1000_v1 }
  0x69   : > { %vm546_vm15 = vmpackc.low %vm241_vm12, %vm240_vm11  ;;  %v223_v34 = vadd.s32 248, %v1000_v1  ;;  %vm244_vm7 = vcmp.eq.s32.totalorder %v204_v31, %v1011_v11  ;;  %v206_v35 = vadd.s32 112, %v1000_v1  ;;  %v207_v36 = vadd.s32 120, %v1000_v1 }
  0x6a   : > { %579 = vmatpush3.bf16.msk.msra.mxu0 %vm542_vm3, %v820_v14  ;;  %vm564_vm0 = vmpackc.low %vm259_vm14, %vm258_vm13  ;;  %vm260_vm3 = vcmp.eq.s32.totalorder %v220_v29, %v1011_v11  ;;  %vm245_vm8 = vcmp.eq.s32.totalorder %v205_v32, %v1011_v11 }
  0x6b   : > { %580 = vmatprep.subr.msk.bf16.mxu0 %vm560_vm4, %v820_v14  ;;  %vm261_vm4 = vcmp.eq.s32.totalorder %v221_v30, %v1011_v11  ;;  %vm548_vm5 = vmpackc.low %vm243_vm2, %vm242_vm1  ;;  %vm246_vm13 = vcmp.eq.s32.totalorder %v206_v35, %v1011_v11  ;;  %vm247_vm14 = vcmp.eq.s32.totalorder %v207_v36, %v1011_v11 }
  0x6c   : > { %vm566_vm6 = vmpackc.low %vm261_vm4, %vm260_vm3 }
  0x6d   : > { %vm550_vm11 = vmpackc.low %vm245_vm8, %vm244_vm7 }
  0x6e   : > { %581 = vmatpush3.bf16.msk.msra.mxu0 %vm544_vm9, %v820_v14  ;;  %vm262_vm9 = vcmp.eq.s32.totalorder %v222_v33, %v1011_v11 }
  0x6f   : > { %582 = vmatprep.subr.msk.bf16.mxu0 %vm562_vm10, %v820_v14  ;;  %vm263_vm10 = vcmp.eq.s32.totalorder %v223_v34, %v1011_v11 }
  0x70   : > { %vm568_vm12 = vmpackc.low %vm263_vm10, %vm262_vm9 }
  0x72   : > { %583 = vmatpush3.bf16.msk.msra.mxu0 %vm546_vm15, %v820_v14  ;;  %vm552_vm15 = vmpackc.low %vm247_vm14, %vm246_vm13 }
  0x73   : > { %584 = vmatprep.subr.msk.bf16.mxu0 %vm564_vm0, %v820_v14 }
  0x76   : > { %585 = vmatpush3.bf16.msk.msra.mxu0 %vm548_vm5, %v820_v14 }
  0x77   : > { %586 = vmatprep.subr.msk.bf16.mxu0 %vm566_vm6, %v820_v14 }
  0x7a   : > { %587 = vmatpush3.bf16.msk.msra.mxu0 %vm550_vm11, %v820_v14 }
  0x7b   : > { %588 = vmatprep.subr.msk.bf16.mxu0 %vm568_vm12, %v820_v14 }
  0x7e   : > { %589 = vmatpush3.bf16.msk.msra.mxu0 %vm552_vm15, %v820_v14 }
  0x81   : > { %385 = vmatmul.mubr.bf16.vlgmr.msra.gmra.mrb[0].mxu0 %v536_v37 }
 0x154   : > { %v590_v38 = vpop.f32.mrb[0].mxu0 }
 0x155   : > { %v591_v39 = vpop.f32.mrb[1].mxu0 }
 0x156   : > { %v592_v40 = vadd.f32 %v591_v39, %v590_v38  ;;  %v593_v41 = vpop.f32.mrb[2].mxu0 }
 0x157   : > { %v594_v42 = vpop.f32.mrb[3].mxu0 }
 0x158   : > { %392 = vst [vmem:[%s188_s21] sm:$0xff] %v592_v40 }
 0x159   : > { %743 = shalt.err (!%p740_p5)
}
 0x15a   : > { %s744_s24 = scalar_lea.hbm %s1089_s26, 128  ;;  %s748_s30 = scalar_lea.hbm %s1140_s2, 256 }
 0x15b   : > { %p745_p10 = scmp.ne.s32.totalorder %s1089_s26, %s744_s24  ;;  %p749_p7 = scmp.lt.u32.totalorder %s1089_s26, %s1140_s2 }
 0x15c   : > { %p750_p3 = scmp.lt.u32.totalorder %s748_s30, %s744_s24  ;;  %p752_p11 = scmp.lt.u32.totalorder %s744_s24, %s1089_s26 }
 0x15d   : > { %p746_p4 = pnand %p745_p10, %p938_p13 }
 0x15e   : > { %p751_p2 = por %p750_p3, %p749_p7 }
 0x15f   : > { %p747_p1 = pneg %p746_p4 }
 0x160   : > { %p753_p6 = por %p752_p11, %p751_p2 }
 0x162   : > { %p754_p8 = pnand %p753_p6, %p747_p1 }
 0x164   : > { %757 = shalt.err (!%p754_p8)
}
 0x165   : > { %602 = dma.vmem_to_hbm [thread:$0]  (%p938_p13), %s1091_s29, 128, %s1089_s26, %s394_s7  }
 0x166 PF: > { %s419_s6 = sand.u32 1, %s796_s9   ;;  %p1159_p9 = scmp.ne.s32.totalorder %s1148_s20, 0 }
 0x167   : > { %p1160_p12 = scmp.ge.s32.totalorder %s816_s14, 2  ;;  %s420_s17 = scalar_lea.sflag [#allocation4], %s419_s6 }
 0x169   : > { %p613_p0 = pnand %p1160_p12, %p1159_p9 }
 0x16b   : > { %791 = dma.done.wait (!%p613_p0), %s420_s17, 128  }
 0x16c   : > { %793 = vsyncadd (!%p613_p0), %s420_s17, 4294967168  ;;  %s19_s14 = sadd.s32 1, %s816_s14   ;;  %s1161_s9 = smov %s800_s10 }
 0x16d   : > { %p16_p5 = scmp.ge.s32.totalorder %s19_s14, 4   ;;  %s1162_s10 = smov %s804_s11 }
 0x16e   : > { %s1163_s11 = smov %s946_s28  ;;  %s1164_s12 = smov %s812_s13 }
 0x16f   : > { %s1165_s13 = smov %s1167_s25  ;;  %18 = sbr.rel (!%p16_p5) target bundleno = 7 (0x7), region = 78 }
 0x176   :  { %425 = vsyncpa [#allocation3], 1 }
 0x177   :  { %427 = vsyncpa [#allocation3 + $0x1], 1 }
 0x178   :  { %428 = vsyncpa [#allocation6], 1 }
 0x179   :  { %429 = vsyncpa [#allocation4], 1 }
 0x17a   :  { %431 = vsyncpa [#allocation4 + $0x1], 1 }

</bundles_post_ra>
